<compile_context>
chip_gen: v6e
topology: v6e:2x2x1
jax: 0.10.0
libtpu: 0.0.40
codegen_flags: <defaults>
</compile_context>

<pallas_src>
import functools

import jax
import jax.numpy as jnp
from jax import lax
from jax.experimental import pallas as pl
from jax.experimental.pallas import tpu as pltpu


# ----------------------------------------------------------------------------
# Helpers
# ----------------------------------------------------------------------------
def _round_up(x, m):
    return (x + m - 1) // m * m


def _pick_k_tile(K):
    Kp = _round_up(K, 128)
    for t in (512, 256, 128):
        if Kp % t == 0:
            return t, Kp
    return 128, Kp  # unreachable


# ----------------------------------------------------------------------------
# Pallas matmul (+ bias epilogue), bf16 operands / f32 accumulate
# ----------------------------------------------------------------------------
def _matmul_bias_kernel(a_ref, b_ref, bias_ref, o_ref, acc_ref):
    k = pl.program_id(2)

    @pl.when(k == 0)
    def _():
        acc_ref[...] = jnp.zeros_like(acc_ref)

    acc_ref[...] += jnp.dot(a_ref[...], b_ref[...],
                            preferred_element_type=jnp.float32)

    @pl.when(k == pl.num_programs(2) - 1)
    def _():
        o_ref[...] = (acc_ref[...] + bias_ref[...]).astype(o_ref.dtype)


@functools.partial(jax.jit, static_argnames=("out_dtype", "operand_dtype"))
def pallas_matmul(a, b, bias=None, out_dtype=jnp.float32,
                  operand_dtype=jnp.bfloat16):
    """a: (M, K), b: (K, N), bias: (N,) or None -> (M, N) in out_dtype."""
    M, K = a.shape
    K2, N = b.shape
    assert K == K2
    a = a.astype(operand_dtype)
    b = b.astype(operand_dtype)

    tm = min(256, _round_up(M, 16))
    Mp = _round_up(M, tm)
    Np = _round_up(N, 128)
    tn = 256 if Np % 256 == 0 else 128
    tk, Kp = _pick_k_tile(K)

    if (Mp, Kp) != (M, K):
        a = jnp.pad(a, ((0, Mp - M), (0, Kp - K)))
    if (Kp, Np) != (K, N):
        b = jnp.pad(b, ((0, Kp - K), (0, Np - N)))
    if bias is None:
        bias_p = jnp.zeros((1, Np), jnp.float32)
    else:
        bias_p = jnp.pad(bias.astype(jnp.float32).reshape(1, N),
                         ((0, 0), (0, Np - N)))

    out = pl.pallas_call(
        _matmul_bias_kernel,
        out_shape=jax.ShapeDtypeStruct((Mp, Np), out_dtype),
        grid_spec=pltpu.PrefetchScalarGridSpec(
            num_scalar_prefetch=0,
            grid=(Mp // tm, Np // tn, Kp // tk),
            in_specs=[
                pl.BlockSpec((tm, tk), lambda i, j, k: (i, k)),
                pl.BlockSpec((tk, tn), lambda i, j, k: (k, j)),
                pl.BlockSpec((1, tn), lambda i, j, k: (0, j)),
            ],
            out_specs=pl.BlockSpec((tm, tn), lambda i, j, k: (i, j)),
            scratch_shapes=[pltpu.VMEM((tm, tn), jnp.float32)],
        ),
        compiler_params=pltpu.CompilerParams(
            dimension_semantics=("parallel", "parallel", "arbitrary")),
    )(a, b, bias_p)
    if (Mp, Np) != (M, N):
        out = out[:M, :N]
    return out


# ----------------------------------------------------------------------------
# BatchNorm (train-mode batch stats), two-pass, M-tiled, fused residual + ReLU
# ----------------------------------------------------------------------------
def _bn_reduce_kernel(x_ref, sum_ref, ssq_ref):
    @pl.when(pl.program_id(1) == 0)
    def _():
        sum_ref[...] = jnp.zeros_like(sum_ref)
        ssq_ref[...] = jnp.zeros_like(ssq_ref)

    x = x_ref[...].astype(jnp.float32)
    sum_ref[...] += jnp.sum(x, axis=0, keepdims=True)
    ssq_ref[...] += jnp.sum(x * x, axis=0, keepdims=True)


def _bn_norm_kernel(*refs, relu, has_res):
    if has_res:
        x_ref, scale_ref, shift_ref, res_ref, o_ref = refs
    else:
        x_ref, scale_ref, shift_ref, o_ref = refs
        res_ref = None
    y = x_ref[...].astype(jnp.float32) * scale_ref[...] + shift_ref[...]
    if res_ref is not None:
        y = y + res_ref[...].astype(jnp.float32)
    if relu:
        y = jnp.maximum(y, 0.0)
    o_ref[...] = y.astype(o_ref.dtype)


@functools.partial(jax.jit, static_argnames=("relu", "eps", "out_dtype"))
def pallas_batchnorm(x, gamma, beta, residual=None, relu=True, eps=1e-5,
                     out_dtype=jnp.bfloat16):
    """Train-mode BN over rows of x: (M, C), M = N*H*W. Optional fused residual
    add + ReLU. Stats are accumulated in f32; activations stored in out_dtype."""
    M, C = x.shape
    Cp = _round_up(C, 128)
    tc = 256 if Cp % 256 == 0 else 128
    tm = min(512, _round_up(M, 16))
    Mp = _round_up(M, tm)

    xp = x if (Mp == M and Cp == C) else jnp.pad(x, ((0, Mp - M), (0, Cp - C)))
    g = jnp.pad(gamma.astype(jnp.float32).reshape(1, C), ((0, 0), (0, Cp - C)))
    b = jnp.pad(beta.astype(jnp.float32).reshape(1, C), ((0, 0), (0, Cp - C)))

    # Pass 1: per-channel sum / sum-of-squares, M tiled as the reduction axis.
    sums, ssqs = pl.pallas_call(
        _bn_reduce_kernel,
        out_shape=(jax.ShapeDtypeStruct((1, Cp), jnp.float32),
                   jax.ShapeDtypeStruct((1, Cp), jnp.float32)),
        grid_spec=pltpu.PrefetchScalarGridSpec(
            num_scalar_prefetch=0,
            grid=(Cp // tc, Mp // tm),
            in_specs=[pl.BlockSpec((tm, tc), lambda j, i: (i, j))],
            out_specs=[pl.BlockSpec((1, tc), lambda j, i: (0, j)),
                       pl.BlockSpec((1, tc), lambda j, i: (0, j))],
        ),
        compiler_params=pltpu.CompilerParams(
            dimension_semantics=("parallel", "arbitrary")),
    )(xp)

    inv_m = 1.0 / float(M)
    mean = sums * inv_m
    # Biased variance (PyTorch train-mode BN). Note: E[x^2]-mean^2 in f32 is
    # adequate here (post-conv activations have |mean| << 100*std); a centered
    # second reduction pass would be the fully-robust alternative.
    var = jnp.maximum(ssqs * inv_m - mean * mean, 0.0)
    inv = lax.rsqrt(var + eps)
    scale = g * inv
    shift = b - mean * scale

    # Pass 2: normalize (+ optional residual add + ReLU), fully parallel tiles.
    has_res = residual is not None
    inputs = [xp, scale, shift]
    in_specs = [pl.BlockSpec((tm, tc), lambda i, j: (i, j)),
                pl.BlockSpec((1, tc), lambda i, j: (0, j)),
                pl.BlockSpec((1, tc), lambda i, j: (0, j))]
    if has_res:
        rp = residual if (Mp == M and Cp == C) else jnp.pad(
            residual, ((0, Mp - M), (0, Cp - C)))
        inputs.append(rp)
        in_specs.append(pl.BlockSpec((tm, tc), lambda i, j: (i, j)))

    kern = functools.partial(_bn_norm_kernel, relu=relu, has_res=has_res)
    out = pl.pallas_call(
        kern,
        out_shape=jax.ShapeDtypeStruct((Mp, Cp), out_dtype),
        grid_spec=pltpu.PrefetchScalarGridSpec(
            num_scalar_prefetch=0,
            grid=(Mp // tm, Cp // tc),
            in_specs=in_specs,
            out_specs=pl.BlockSpec((tm, tc), lambda i, j: (i, j)),
        ),
        compiler_params=pltpu.CompilerParams(
            dimension_semantics=("parallel", "parallel")),
    )(*inputs)
    if (Mp, Cp) != (M, C):
        out = out[:M, :C]
    return out


# ----------------------------------------------------------------------------
# Convolution = im2col (JAX glue) + Pallas matmul
# ----------------------------------------------------------------------------
def _extract_patches(x, kh, kw, stride, padding, dilation, pad_value=0.0):
    """x: (N, H, W, C) -> ((N, Ho, Wo, kh*kw*C), Ho, Wo); K-order = (kh, kw, C)."""
    N, H, W, C = x.shape
    x_p = jnp.pad(x, ((0, 0), (padding, padding), (padding, padding), (0, 0)),
                  constant_values=pad_value)
    Hp, Wp = H + 2 * padding, W + 2 * padding
    Ho = (Hp - (dilation * (kh - 1) + 1)) // stride + 1
    Wo = (Wp - (dilation * (kw - 1) + 1)) // stride + 1
    cols = []
    for i in range(kh):
        for j in range(kw):
            sl = lax.slice(
                x_p,
                (0, i * dilation, j * dilation, 0),
                (N, i * dilation + (Ho - 1) * stride + 1,
                 j * dilation + (Wo - 1) * stride + 1, C),
                (1, stride, stride, 1))
            cols.append(sl)
    patches = jnp.stack(cols, axis=3)                 # (N, Ho, Wo, kh*kw, C)
    return patches.reshape(N, Ho, Wo, kh * kw * C), Ho, Wo


@functools.partial(jax.jit, static_argnames=("kh", "kw", "stride", "padding",
                                             "dilation", "out_dtype"))
def conv2d(x, w_flat, bias=None, *, kh, kw, stride=1, padding=0, dilation=1,
           out_dtype=jnp.bfloat16):
    """x: (N,H,W,Cin), w_flat: (kh*kw*Cin, Cout) -> (N,Ho,Wo,Cout)."""
    N = x.shape[0]
    if kh == 1 and kw == 1 and padding == 0 and dilation == 1:
        xs = x[:, ::stride, ::stride, :] if stride > 1 else x
        Ho, Wo = xs.shape[1], xs.shape[2]
        a = xs.reshape(N * Ho * Wo, xs.shape[3])
    else:
        # TODO(synk): implicit-GEMM conv (fold taps into the K grid axis) would
        # avoid materializing the kh*kw-times-larger patch tensor in HBM.
        patches, Ho, Wo = _extract_patches(x, kh, kw, stride, padding, dilation)
        a = patches.reshape(N * Ho * Wo, -1)
    out = pallas_matmul(a, w_flat, bias, out_dtype=out_dtype)
    return out.reshape(N, Ho, Wo, -1)


def conv_bn(x, p, stride=1, padding=0, dilation=1, relu=True, residual=None):
    """Conv (no bias; BN cancels it) -> train-mode BN (+fused residual/ReLU)."""
    y = conv2d(x, p["w"], None, kh=p["kh"], kw=p["kw"], stride=stride,
               padding=padding, dilation=dilation, out_dtype=jnp.bfloat16)
    N, Ho, Wo, C = y.shape
    res = None if residual is None else residual.reshape(N * Ho * Wo, C)
    y = pallas_batchnorm(y.reshape(N * Ho * Wo, C), p["gamma"], p["beta"],
                         residual=res, relu=relu, out_dtype=jnp.bfloat16)
    return y.reshape(N, Ho, Wo, C)


def maxpool_3x3_s2(x):
    # TODO(synk): 3x3/s2 max-pool window-max left as tiny JAX glue.
    N, _, _, C = x.shape
    patches, Ho, Wo = _extract_patches(x, 3, 3, 2, 1, 1, pad_value=-jnp.inf)
    return jnp.max(patches.reshape(N, Ho, Wo, 9, C), axis=3)


# ----------------------------------------------------------------------------
# Bilinear upsample (align_corners=False) -> NCHW, as two separable Pallas
# matmuls with only small-tensor transposes (big matmuls stay lane-dense).
# ----------------------------------------------------------------------------
def _bilinear_matrix(out_size, in_size):
    scale = in_size / out_size
    dst = jnp.arange(out_size, dtype=jnp.float32)
    src = jnp.clip((dst + 0.5) * scale - 0.5, 0.0, float(in_size - 1))
    lo = jnp.floor(src).astype(jnp.int32)
    hi = jnp.minimum(lo + 1, in_size - 1)
    w_hi = src - lo.astype(jnp.float32)
    w_lo = 1.0 - w_hi
    m = jnp.zeros((out_size, in_size), jnp.float32)
    rows = jnp.arange(out_size)
    m = m.at[rows, lo].add(w_lo)
    m = m.at[rows, hi].add(w_hi)
    return m


def upsample_bilinear_to_nchw(x, Ho, Wo):
    """x: (N, Hf, Wf, C) f32 -> (N, C, Ho, Wo) f32, matching F.interpolate."""
    N, Hf, Wf, C = x.shape
    Rw = _bilinear_matrix(Wo, Wf)                       # (Wo, Wf)
    Rh = _bilinear_matrix(Ho, Hf)                       # (Ho, Hf)
    # Width pass on the small pre-resize tensor: rows (n,h,c), lane dim = Wo.
    t = jnp.transpose(x, (0, 1, 3, 2)).reshape(N * Hf * C, Wf)
    t = pallas_matmul(t, Rw.T, out_dtype=jnp.float32, operand_dtype=jnp.float32)
    t = t.reshape(N, Hf, C, Wo)
    # Height pass: one big lane-dense matmul (Ho, Hf) @ (Hf, N*C*Wo).
    t = jnp.transpose(t, (1, 0, 2, 3)).reshape(Hf, N * C * Wo)
    t = pallas_matmul(Rh, t, out_dtype=jnp.float32, operand_dtype=jnp.float32)
    t = t.reshape(Ho, N, C, Wo)
    return jnp.transpose(t, (1, 2, 0, 3))               # (N, C, Ho, Wo)


# ----------------------------------------------------------------------------
# Deterministic parameter construction (shapes per the PyTorch module __init__)
# ----------------------------------------------------------------------------
def _conv_w(key, cin, cout, kh, kw):
    fan_in = cin * kh * kw
    w = jax.random.normal(key, (kh, kw, cin, cout), jnp.float32)
    return (w / jnp.sqrt(float(fan_in))).reshape(kh * kw * cin, cout)


def make_conv_bn(key, cin, cout, kh, kw):
    # conv bias omitted on purpose: it is mathematically cancelled by the
    # train-mode BatchNorm that always follows these convs.
    return dict(w=_conv_w(key, cin, cout, kh, kw), kh=kh, kw=kw,
                gamma=jnp.ones((cout,), jnp.float32),
                beta=jnp.zeros((cout,), jnp.float32))


def make_bottleneck(key, cin, mid, stride, dilation):
    ks = jax.random.split(key, 4)
    out_ch = mid * 4
    p = dict(conv1=make_conv_bn(ks[0], cin, mid, 1, 1),
             conv2=make_conv_bn(ks[1], mid, mid, 3, 3),
             conv3=make_conv_bn(ks[2], mid, out_ch, 1, 1),
             stride=stride, dilation=dilation, downsample=None)
    if stride != 1 or cin != out_ch:
        p["downsample"] = make_conv_bn(ks[3], cin, out_ch, 1, 1)
    return p


def bottleneck_forward(x, p):
    out = conv_bn(x, p["conv1"], relu=True)
    out = conv_bn(out, p["conv2"], stride=p["stride"], padding=p["dilation"],
                  dilation=p["dilation"], relu=True)
    if p["downsample"] is not None:
        idn = conv_bn(x, p["downsample"], stride=p["stride"], relu=False)
    else:
        idn = x
    # conv3 BN + residual add + ReLU fused into one Pallas normalize pass.
    return conv_bn(out, p["conv3"], relu=True, residual=idn)


def make_resnet50(key):
    ks = jax.random.split(key, 5)

    def make_layer(k, cin, mid, blocks, stride, dilation):
        bks = jax.random.split(k, blocks)
        layer = [make_bottleneck(bks[0], cin, mid, stride, dilation)]
        for i in range(1, blocks):
            layer.append(make_bottleneck(bks[i], mid * 4, mid, 1, dilation))
        return layer

    return dict(
        conv1=make_conv_bn(ks[0], 3, 64, 7, 7),
        layer1=make_layer(ks[1], 64, 64, 3, 1, 1),
        layer2=make_layer(ks[2], 256, 128, 4, 2, 1),
        layer3=make_layer(ks[3], 512, 256, 6, 2, 1),
        layer5=make_layer(ks[4], 1024, 512, 3, 1, 2),  # OS=16 dilated layer
    )


def resnet50_forward(x, p):
    y = conv_bn(x, p["conv1"], stride=2, padding=3, relu=True)
    y = maxpool_3x3_s2(y)
    for name in ("layer1", "layer2", "layer3", "layer5"):
        for blk in p[name]:
            y = bottleneck_forward(y, blk)
    return y  # (N, H/16, W/16, 2048), bf16


def make_aspp(key, num_classes):
    ks = jax.random.split(key, 8)
    return dict(
        c1=make_conv_bn(ks[0], 2048, 256, 1, 1),
        c3_1=make_conv_bn(ks[1], 2048, 256, 3, 3),
        c3_2=make_conv_bn(ks[2], 2048, 256, 3, 3),
        c3_3=make_conv_bn(ks[3], 2048, 256, 3, 3),
        c_img=make_conv_bn(ks[4], 2048, 256, 1, 1),
        c_cat=make_conv_bn(ks[5], 1280, 256, 1, 1),
        c_out_w=_conv_w(ks[6], 256, num_classes, 1, 1),
        c_out_b=jax.random.normal(ks[7], (num_classes,), jnp.float32) * 0.01,
    )


def aspp_forward(fm, p):
    N, Hf, Wf, _ = fm.shape
    out1 = conv_bn(fm, p["c1"], relu=True)
    out2 = conv_bn(fm, p["c3_1"], padding=6, dilation=6, relu=True)
    out3 = conv_bn(fm, p["c3_2"], padding=12, dilation=12, relu=True)
    out4 = conv_bn(fm, p["c3_3"], padding=18, dilation=18, relu=True)

    # Image branch: global avg pool -> 1x1 conv -> BN -> ReLU -> upsample.
    # Only N (<=2) rows of work, so this stays as tiny JAX glue; the bilinear
    # upsample of a 1x1 map is an exact broadcast.
    img = jnp.mean(fm.astype(jnp.float32), axis=(1, 2))          # (N, 2048)
    img = img @ p["c_img"]["w"].astype(jnp.float32)              # (N, 256)
    mu = jnp.mean(img, axis=0, keepdims=True)
    var = jnp.mean((img - mu) ** 2, axis=0, keepdims=True)
    img = (img - mu) * lax.rsqrt(var + 1e-5) * p["c_img"]["gamma"] \
        + p["c_img"]["beta"]
    img = jnp.maximum(img, 0.0)
    img = jnp.broadcast_to(img[:, None, None, :],
                           (N, Hf, Wf, img.shape[-1])).astype(jnp.bfloat16)

    cat = jnp.concatenate([out1, out2, out3, out4, img], axis=-1)  # 1280 ch
    out = conv_bn(cat, p["c_cat"], relu=True)
    # Final classifier 1x1 conv (keeps its bias, no BN after) -> f32 logits.
    out = conv2d(out, p["c_out_w"], p["c_out_b"], kh=1, kw=1,
                 out_dtype=jnp.float32)
    return out                                                     # (N,Hf,Wf,K)


def deeplabv3_forward(x_nchw, params):
    N, C, H, W = x_nchw.shape
    x = jnp.transpose(x_nchw, (0, 2, 3, 1)).astype(jnp.bfloat16)   # NCHW->NHWC
    fm = resnet50_forward(x, params["resnet"])
    out = aspp_forward(fm, params["aspp"])
    return upsample_bilinear_to_nchw(out, H, W)                    # NCHW f32


# ----------------------------------------------------------------------------
if __name__ == "__main__":
    num_classes = 16
    key = jax.random.PRNGKey(0)
    kparams, kx = jax.random.split(key)
    params = dict(
        resnet=make_resnet50(jax.random.fold_in(kparams, 0)),
        aspp=make_aspp(jax.random.fold_in(kparams, 1), num_classes),
    )
    # Small input consistent with the module: NCHW, 3 channels, 32x32
    # (divisible by output stride 16 -> 2x2 feature map).
    x = jax.random.normal(kx, (2, 3, 32, 32), jnp.float32)

    out = deeplabv3_forward(x, params)
    out = jax.block_until_ready(out)
    assert out.shape == (2, num_classes, 32, 32), out.shape
    assert jnp.all(jnp.isfinite(out))
    print("KERNEL_OK")
</pallas_src>

<mosaic_0001>
module attributes {stable_mosaic.version = 11 : i64} {
  func.func @_matmul_bias_kernel(%arg0: i32, %arg1: i32, %arg2: i32, %arg3: memref<256x256xbf16, #tpu.memory_space<vmem>>, %arg4: memref<256x128xbf16, #tpu.memory_space<vmem>>, %arg5: memref<1x128xf32, #tpu.memory_space<vmem>>, %arg6: memref<256x128xbf16, #tpu.memory_space<vmem>>, %arg7: memref<256x128xf32, #tpu.memory_space<vmem>>) attributes {dimension_semantics = [#tpu.dimension_semantics<parallel>, #tpu.dimension_semantics<parallel>, #tpu.dimension_semantics<arbitrary>], iteration_bounds = array<i64: 2, 1, 1>, scalar_prefetch = 0 : i64, scratch_operands = 1 : i64, tpu.core_type = #tpu.core_type<tc>, window_params = [{transform_indices = @transform_0, window_bounds = array<i64: 256, 256>}, {transform_indices = @transform_1, window_bounds = array<i64: 256, 128>}, {transform_indices = @transform_2, window_bounds = array<i64: 1, 128>}, {transform_indices = @transform_3, window_bounds = array<i64: 256, 128>}]} {
    %c0_i32 = arith.constant 0 : i32
    %0 = arith.cmpi eq, %arg2, %c0_i32 : i32
    %1 = arith.extui %0 : i1 to i32
    %c0_i32_0 = arith.constant 0 : i32
    %2 = arith.cmpi ne, %1, %c0_i32_0 : i32
    scf.if %2 {
      %cst_10 = arith.constant 0.000000e+00 : f32
      %12 = vector.broadcast %cst_10 : f32 to vector<256x128xf32>
      %c0_11 = arith.constant 0 : index
      %c0_12 = arith.constant 0 : index
      %13 = vector.load %arg7[%c0_11, %c0_12] : memref<256x128xf32, #tpu.memory_space<vmem>>, vector<256x128xf32>
      tpu.vector_store %arg7[%c0_11, %c0_12], %12 {strides = array<i32>} : memref<256x128xf32, #tpu.memory_space<vmem>>, vector<256x128xf32>,
    } else {
    }
    %c0 = arith.constant 0 : index
    %c0_1 = arith.constant 0 : index
    %3 = vector.load %arg7[%c0, %c0_1] : memref<256x128xf32, #tpu.memory_space<vmem>>, vector<256x128xf32>
    %c0_2 = arith.constant 0 : index
    %c0_3 = arith.constant 0 : index
    %4 = vector.load %arg3[%c0_2, %c0_3] : memref<256x256xbf16, #tpu.memory_space<vmem>>, vector<256x256xbf16>
    %c0_4 = arith.constant 0 : index
    %c0_5 = arith.constant 0 : index
    %5 = vector.load %arg4[%c0_4, %c0_5] : memref<256x128xbf16, #tpu.memory_space<vmem>>, vector<256x128xbf16>
    %cst = arith.constant dense<0.000000e+00> : vector<256x128xf32>
    %6 = tpu.matmul %4, %5, %cst {dimension_numbers = #tpu.dot_dimension_numbers<[1], [0], [0], [1], [0, 0, 1, 1], [], []>} : vector<256x256xbf16>, vector<256x128xbf16>, vector<256x128xf32> -> vector<256x128xf32>
    %7 = arith.addf %3, %6 : vector<256x128xf32>
    %c0_6 = arith.constant 0 : index
    %c0_7 = arith.constant 0 : index
    %8 = vector.load %arg7[%c0_6, %c0_7] : memref<256x128xf32, #tpu.memory_space<vmem>>, vector<256x128xf32>
    tpu.vector_store %arg7[%c0_6, %c0_7], %7 {strides = array<i32>} : memref<256x128xf32, #tpu.memory_space<vmem>>, vector<256x128xf32>,
    %c0_i32_8 = arith.constant 0 : i32
    %9 = arith.cmpi eq, %arg2, %c0_i32_8 : i32
    %10 = arith.extui %9 : i1 to i32
    %c0_i32_9 = arith.constant 0 : i32
    %11 = arith.cmpi ne, %10, %c0_i32_9 : i32
    scf.if %11 {
      %c0_10 = arith.constant 0 : index
      %c0_11 = arith.constant 0 : index
      %12 = vector.load %arg7[%c0_10, %c0_11] : memref<256x128xf32, #tpu.memory_space<vmem>>, vector<256x128xf32>
      %c0_12 = arith.constant 0 : index
      %c0_13 = arith.constant 0 : index
      %13 = vector.load %arg5[%c0_12, %c0_13] : memref<1x128xf32, #tpu.memory_space<vmem>>, vector<1x128xf32>
      %14 = vector.broadcast %13 : vector<1x128xf32> to vector<256x128xf32>
      %15 = arith.addf %12, %14 : vector<256x128xf32>
      %16 = arith.truncf %15 : vector<256x128xf32> to vector<256x128xbf16>
      %c0_14 = arith.constant 0 : index
      %c0_15 = arith.constant 0 : index
      %17 = vector.load %arg6[%c0_14, %c0_15] : memref<256x128xbf16, #tpu.memory_space<vmem>>, vector<256x128xbf16>
      tpu.vector_store %arg6[%c0_14, %c0_15], %16 {strides = array<i32>} : memref<256x128xbf16, #tpu.memory_space<vmem>>, vector<256x128xbf16>,
    } else {
    }
    return
  }
  func.func @transform_0(%arg0: i32, %arg1: i32, %arg2: i32) -> (i32, i32) {
    %c0_i32 = arith.constant 0 : i32
    return %arg0, %arg2 : i32, i32
  }
  func.func @transform_1(%arg0: i32, %arg1: i32, %arg2: i32) -> (i32, i32) {
    %c0_i32 = arith.constant 0 : i32
    return %arg2, %arg1 : i32, i32
  }
  func.func @transform_2(%arg0: i32, %arg1: i32, %arg2: i32) -> (i32, i32) {
    %c0_i32 = arith.constant 0 : i32
    %c0_i32_0 = arith.constant 0 : i32
    return %c0_i32, %arg1 : i32, i32
  }
  func.func @transform_3(%arg0: i32, %arg1: i32, %arg2: i32) -> (i32, i32) {
    %c0_i32 = arith.constant 0 : i32
    return %arg0, %arg1 : i32, i32
  }
}

</mosaic_0001>

<bundles_post_ra>
// kernel: pallas_matmul.1
= control target key start
LH: loop header
LB: loop body
LE: loop exit
PB: predicated region body
PF: predicated region fallthrough
CT: control target
= control target key end

     0   :  { %s1712_s12 = smov 0   ;;  %s1714_s13 = smov 0   ;;  %s1886_s0 = inlined_call_operand.vmem [shape: bf16[512,256], index: 0, kind: input, shape index: {}]   ;;  %s1887_s1 = inlined_call_operand.vmem [shape: bf16[256,128], index: 1, kind: input, shape index: {}]   ;;  %s1888_s2 = inlined_call_operand.vmem [shape: f32[1,128], index: 2, kind: input, shape index: {}]   ;;  %s1889_s3 = inlined_call_operand.vmem [shape: bf16[512,128], index: 3, kind: output, shape index: {}]  }
   0x1   :  { %s1716_s14 = smov 0  }
   0x2 LB: > { %s32_s15 = sadd.s32 1, %s1686_s13  ;;  %p1235_p0 = scmp.ge.s32.totalorder %s1690_s14, 1  ;;  %s1690_s14 = sphi %s1716_s14, %s13_s14   ;;  %s1686_s13 = sphi %s1714_s13, %s1891_s13   ;;  %s1682_s12 = sphi %s1712_s12, %s1890_s12  }
   0x3   : > { %p34_p1 = scmp.ge.s32.totalorder %s32_s15, 2  ;;  %p191_p2 = scmp.lt.s32.totalorder %s1690_s14, 3 }
   0x5   : > { %s1893_s15 = smov (%p34_p1, %s32_s15), 0  ;;  %p192_p3 = pnand %p1235_p0, %p191_p2 }
   0x6   : > { %s1236_s18 = sshll.u32 (!%p192_p3), %s1682_s12, 5 }
   0x7   : > { %195 = sbr.rel (%p192_p3) target bundleno = 307 (0x133), region = 32  ;;  %p236_p4 = scmp.lt.s32.totalorder (!%p192_p3), %s1236_s18, 63 }
   0xc   : > { %v1604_v0 = vld [vmem:[%s1887_s1 + $0x78] sm:$0xff]   ;;  %v1606_v2 = vld [vmem:[%s1887_s1 + $0x70] sm:$0xff]   ;;  %v1608_v4 = vld [vmem:[%s1887_s1 + $0x68] sm:$0xff]   ;;  %s1895_s18 = smov (!%p236_p4, %s1236_s18), 63 }
   0xd   : > { %v1605_v1 = vld [vmem:[%s1887_s1 + $0x38] sm:$0xff]   ;;  %1452 = vmatprep.subr.bf16.mxu0 %v1604_v0  ;;  %1564 = vmatprep.subr.bf16.mxu1 %v1604_v0  ;;  %v1607_v3 = vld [vmem:[%s1887_s1 + $0x30] sm:$0xff]   ;;  %v1609_v5 = vld [vmem:[%s1887_s1 + $0x28] sm:$0xff]   ;;  %s1324_s6 = sshll.u32 %s1895_s18, 3  ;;  %s1240_s5 = sshll.u32 %s1895_s18, 2 }
   0xe   : > { %1453 = vmatpush3.bf16.msra.mxu0 %v1605_v1  ;;  %1572 = vmatpush3.bf16.msra.mxu1 %v1605_v1  ;;  %v1610_v6 = vld [vmem:[%s1887_s1 + $0x60] sm:$0xff]   ;;  %v1612_v8 = vld [vmem:[%s1887_s1 + $0x58] sm:$0xff]   ;;  %s1763_s11 = scalar_lea.vmem %s1886_s0, %s1324_s6  ;;  %v1614_v10 = vld [vmem:[%s1887_s1 + $0x50] sm:$0xff]   ;;  %s1831_s8 = scalar_lea.vmem %s1889_s3, %s1240_s5 }
   0xf   : > { %1454 = vmatprep.subr.bf16.mxu0 %v1606_v2  ;;  %1565 = vmatprep.subr.bf16.mxu1 %v1606_v2  ;;  %v1611_v7 = vld [vmem:[%s1887_s1 + $0x20] sm:$0xff]   ;;  %v1613_v9 = vld [vmem:[%s1887_s1 + $0x18] sm:$0xff]   ;;  %v1615_v13 = vld [vmem:[%s1887_s1 + $0x10] sm:$0xff]  }
  0x10   : > { %v1622_v11 = vld [vmem:[%s1763_s11 + $0x4] ss:$8 sps:$4 sm:$0xff]   ;;  %v1620_v18 = vld [vmem:[%s1763_s11] ss:$8 sps:$4 sm:$0xff]   ;;  %v1626_v20 = vld [vmem:[%s1763_s11 + $0x14] ss:$8 sps:$4 sm:$0xff]  }
  0x11   : > { %v1625_v12 = vld [vmem:[%s1763_s11 + $0x84] ss:$8 sps:$4 sm:$0xff]   ;;  %688 = vmatprep.mubr.bf16.mxu0 %v1622_v11  ;;  %v1623_v19 = vld [vmem:[%s1763_s11 + $0x80] ss:$8 sps:$4 sm:$0xff]   ;;  %v1628_v21 = vld [vmem:[%s1763_s11 + $0x94] ss:$8 sps:$4 sm:$0xff]  }
  0x12   : > { %1455 = vmatpush3.bf16.msra.mxu0 %v1607_v3  ;;  %1573 = vmatpush3.bf16.msra.mxu1 %v1607_v3  ;;  %v1616_v14 = vld [vmem:[%s1887_s1 + $0x48] sm:$0xff]   ;;  %v1618_v16 = vld [vmem:[%s1887_s1 + $0x40] sm:$0xff]   ;;  %v1630_v22 = vld [vmem:[%s1763_s11 + $0x10] ss:$8 sps:$4 sm:$0xff]  }
  0x13   : > { %1456 = vmatprep.subr.bf16.mxu0 %v1608_v4  ;;  %1566 = vmatprep.subr.bf16.mxu1 %v1608_v4  ;;  %v1617_v15 = vld [vmem:[%s1887_s1 + $0x8] sm:$0xff]   ;;  %v1619_v17 = vld [vmem:[%s1887_s1] sm:$0xff]   ;;  %v1631_v23 = vld [vmem:[%s1763_s11 + $0x90] ss:$8 sps:$4 sm:$0xff]  }
  0x14   : > { %752 = vmatprep.mubr.bf16.mxu1 %v1625_v12  ;;  %v1632_v24 = vld [vmem:[%s1763_s11 + $0x24] ss:$8 sps:$4 sm:$0xff]   ;;  %v1636_v26 = vld [vmem:[%s1763_s11 + $0x20] ss:$8 sps:$4 sm:$0xff]   ;;  %v1638_v28 = vld [vmem:[%s1763_s11 + $0x34] ss:$8 sps:$4 sm:$0xff]  }
  0x15   : > { %v1634_v25 = vld [vmem:[%s1763_s11 + $0xa4] ss:$8 sps:$4 sm:$0xff]   ;;  %v1637_v27 = vld [vmem:[%s1763_s11 + $0xa0] ss:$8 sps:$4 sm:$0xff]   ;;  %v1640_v29 = vld [vmem:[%s1763_s11 + $0xb4] ss:$8 sps:$4 sm:$0xff]  }
  0x16   : > { %1457 = vmatpush3.bf16.msra.mxu0 %v1609_v5  ;;  %1574 = vmatpush3.bf16.msra.mxu1 %v1609_v5  ;;  %v1642_v30 = vld [vmem:[%s1763_s11 + $0x30] ss:$8 sps:$4 sm:$0xff]   ;;  %v1644_v32 = vld [vmem:[%s1763_s11 + $0x44] ss:$8 sps:$4 sm:$0xff]   ;;  %v1648_v34 = vld [vmem:[%s1763_s11 + $0x40] ss:$8 sps:$4 sm:$0xff]  }
  0x17   : > { %1458 = vmatprep.subr.bf16.mxu0 %v1610_v6  ;;  %1567 = vmatprep.subr.bf16.mxu1 %v1610_v6  ;;  %v1643_v31 = vld [vmem:[%s1763_s11 + $0xb0] ss:$8 sps:$4 sm:$0xff]   ;;  %v1646_v33 = vld [vmem:[%s1763_s11 + $0xc4] ss:$8 sps:$4 sm:$0xff]   ;;  %v1649_v35 = vld [vmem:[%s1763_s11 + $0xc0] ss:$8 sps:$4 sm:$0xff]  }
  0x18   : > { %v1650_v36 = vld [vmem:[%s1763_s11 + $0x54] ss:$8 sps:$4 sm:$0xff]   ;;  %v1654_v38 = vld [vmem:[%s1763_s11 + $0x50] ss:$8 sps:$4 sm:$0xff]   ;;  %v1656_v40 = vld [vmem:[%s1763_s11 + $0x64] ss:$8 sps:$4 sm:$0xff]  }
  0x19   : > { %v1652_v37 = vld [vmem:[%s1763_s11 + $0xd4] ss:$8 sps:$4 sm:$0xff]   ;;  %v1655_v39 = vld [vmem:[%s1763_s11 + $0xd0] ss:$8 sps:$4 sm:$0xff]   ;;  %v1658_v41 = vld [vmem:[%s1763_s11 + $0xe4] ss:$8 sps:$4 sm:$0xff]  }
  0x1a   : > { %1459 = vmatpush3.bf16.msra.mxu0 %v1611_v7  ;;  %1575 = vmatpush3.bf16.msra.mxu1 %v1611_v7  ;;  %v1660_v42 = vld [vmem:[%s1763_s11 + $0x60] ss:$8 sps:$4 sm:$0xff]   ;;  %v1662_v44 = vld [vmem:[%s1763_s11 + $0x74] ss:$8 sps:$4 sm:$0xff]   ;;  %v1666_v46 = vld [vmem:[%s1763_s11 + $0x70] ss:$8 sps:$4 sm:$0xff]  }
  0x1b   : > { %1460 = vmatprep.subr.bf16.mxu0 %v1612_v8  ;;  %1568 = vmatprep.subr.bf16.mxu1 %v1612_v8  ;;  %v1661_v43 = vld [vmem:[%s1763_s11 + $0xe0] ss:$8 sps:$4 sm:$0xff]   ;;  %v1664_v45 = vld [vmem:[%s1763_s11 + $0xf4] ss:$8 sps:$4 sm:$0xff]   ;;  %v1667_v47 = vld [vmem:[%s1763_s11 + $0xf0] ss:$8 sps:$4 sm:$0xff]  }
  0x1c   : > { %v1821_v56 = vld [vmem:[%s1888_s2] ss:$0 sm:$0xff] }
  0x1e   : > { %1461 = vmatpush3.bf16.msra.mxu0 %v1613_v9  ;;  %1576 = vmatpush3.bf16.msra.mxu1 %v1613_v9 }
  0x1f   : > { %1462 = vmatprep.subr.bf16.mxu0 %v1614_v10  ;;  %1569 = vmatprep.subr.bf16.mxu1 %v1614_v10 }
  0x22   : > { %1463 = vmatpush3.bf16.msra.mxu0 %v1615_v13  ;;  %1577 = vmatpush3.bf16.msra.mxu1 %v1615_v13 }
  0x23   : > { %1464 = vmatprep.subr.bf16.mxu0 %v1616_v14  ;;  %1570 = vmatprep.subr.bf16.mxu1 %v1616_v14 }
  0x26   : > { %1465 = vmatpush3.bf16.msra.mxu0 %v1617_v15  ;;  %1578 = vmatpush3.bf16.msra.mxu1 %v1617_v15 }
  0x27   : > { %1466 = vmatprep.subr.bf16.mxu0 %v1618_v16  ;;  %1571 = vmatprep.subr.bf16.mxu1 %v1618_v16 }
  0x2a   : > { %1467 = vmatpush3.bf16.msra.mxu0 %v1619_v17  ;;  %1579 = vmatpush3.bf16.msra.mxu1 %v1619_v17 }
  0x2d   : > { %689 = vmatmul.mubr.bf16.vlgmr.msra.gmra.mxu0 %v1620_v18  ;;  %753 = vmatmul.mubr.bf16.vlgmr.msra.gmra.mxu1 %v1623_v19 }
  0x2e   : > { %696 = vmatprep.mubr.bf16.mxu0 %v1626_v20  ;;  %760 = vmatprep.mubr.bf16.mxu1 %v1628_v21 }
  0x35   : > { %697 = vmatmul.mubr.bf16.gmra.mxu0 %v1630_v22  ;;  %761 = vmatmul.mubr.bf16.gmra.mxu1 %v1631_v23 }
  0x36   : > { %704 = vmatprep.mubr.bf16.mxu0 %v1632_v24  ;;  %768 = vmatprep.mubr.bf16.mxu1 %v1634_v25 }
  0x3d   : > { %705 = vmatmul.mubr.bf16.gmra.mxu0 %v1636_v26  ;;  %769 = vmatmul.mubr.bf16.gmra.mxu1 %v1637_v27 }
  0x3e   : > { %712 = vmatprep.mubr.bf16.mxu0 %v1638_v28  ;;  %776 = vmatprep.mubr.bf16.mxu1 %v1640_v29 }
  0x45   : > { %713 = vmatmul.mubr.bf16.gmra.mxu0 %v1642_v30  ;;  %777 = vmatmul.mubr.bf16.gmra.mxu1 %v1643_v31 }
  0x46   : > { %720 = vmatprep.mubr.bf16.mxu0 %v1644_v32  ;;  %784 = vmatprep.mubr.bf16.mxu1 %v1646_v33 }
  0x4d   : > { %721 = vmatmul.mubr.bf16.gmra.mxu0 %v1648_v34  ;;  %785 = vmatmul.mubr.bf16.gmra.mxu1 %v1649_v35 }
  0x4e   : > { %728 = vmatprep.mubr.bf16.mxu0 %v1650_v36  ;;  %792 = vmatprep.mubr.bf16.mxu1 %v1652_v37 }
  0x55   : > { %729 = vmatmul.mubr.bf16.gmra.mxu0 %v1654_v38  ;;  %793 = vmatmul.mubr.bf16.gmra.mxu1 %v1655_v39 }
  0x56   : > { %736 = vmatprep.mubr.bf16.mxu0 %v1656_v40  ;;  %800 = vmatprep.mubr.bf16.mxu1 %v1658_v41 }
  0x5d   : > { %737 = vmatmul.mubr.bf16.gmra.mxu0 %v1660_v42  ;;  %801 = vmatmul.mubr.bf16.gmra.mxu1 %v1661_v43 }
  0x5e   : > { %744 = vmatprep.mubr.bf16.mxu0 %v1662_v44  ;;  %808 = vmatprep.mubr.bf16.mxu1 %v1664_v45 }
  0x65   : > { %745 = vmatmul.mubr.bf16.gmra.mxu0 %v1666_v46  ;;  %809 = vmatmul.mubr.bf16.gmra.mxu1 %v1667_v47 }
  0xed   : > { %v1468_v48 = vpop.f32.mrf.mxu0  ;;  %v1516_v49 = vpop.f32.mrf.mxu1 }
  0xef   : > { %v1469_v50 = vpop.f32.mrf.mxu0  ;;  %v1517_v51 = vpop.f32.mrf.mxu1 }
  0xf0   : > { %v1470_v54 = vadd.f32 %v1469_v50, %v1468_v48  ;;  %v1518_v55 = vadd.f32 %v1517_v51, %v1516_v49 }
  0xf1   : > { %v1471_v52 = vpop.f32.mrf.mxu0  ;;  %v1519_v53 = vpop.f32.mrf.mxu1 }
  0xf2   : > { %v923_v63 = vadd.f32 %v1470_v54, %v1821_v56  ;;  %v939_v0 = vadd.f32 %v1518_v55, %v1821_v56 }
  0xf3   : > { %v1472_v57 = vpop.f32.mrf.mxu0  ;;  %v1520_v58 = vpop.f32.mrf.mxu1 }
  0xf4   : > { %v1473_v59 = vadd.f32 %v1472_v57, %v1471_v52  ;;  %v1521_v60 = vadd.f32 %v1520_v58, %v1519_v53 }
  0xf5   : > { %v1474_v61 = vpop.f32.mrf.mxu0  ;;  %v1522_v62 = vpop.f32.mrf.mxu1 }
  0xf6   : > { %v924_v1 = vadd.f32 %v1473_v59, %v1821_v56  ;;  %v940_v2 = vadd.f32 %v1521_v60, %v1821_v56 }
  0xf7   : > { %v1475_v3 = vpop.f32.mrf.mxu0  ;;  %v1523_v4 = vpop.f32.mrf.mxu1 }
  0xf8   : > { %v1360_v5 = vpack.c.bf16 %v924_v1, %v923_v63  ;;  %v1400_v6 = vpack.c.bf16 %v940_v2, %v939_v0  ;;  %v1476_v9 = vadd.f32 %v1475_v3, %v1474_v61  ;;  %v1524_v10 = vadd.f32 %v1523_v4, %v1522_v62 }
  0xf9   : > { %v1477_v7 = vpop.f32.mrf.mxu0  ;;  %v1525_v8 = vpop.f32.mrf.mxu1 }
  0xfa   : > { %1361 = vst [vmem:[%s1831_s8] sm:$0xff] %v1360_v5   ;;  %1444 = vst [vmem:[%s1831_s8 + $0x40] sm:$0xff] %v1400_v6   ;;  %v925_v17 = vadd.f32 %v1476_v9, %v1821_v56  ;;  %v941_v18 = vadd.f32 %v1524_v10, %v1821_v56 }
  0xfb   : > { %v1478_v11 = vpop.f32.mrf.mxu0  ;;  %v1526_v12 = vpop.f32.mrf.mxu1 }
  0xfc   : > { %v1479_v13 = vadd.f32 %v1478_v11, %v1477_v7  ;;  %v1527_v14 = vadd.f32 %v1526_v12, %v1525_v8 }
  0xfd   : > { %v1480_v15 = vpop.f32.mrf.mxu0  ;;  %v1528_v16 = vpop.f32.mrf.mxu1 }
  0xfe   : > { %v926_v19 = vadd.f32 %v1479_v13, %v1821_v56  ;;  %v942_v20 = vadd.f32 %v1527_v14, %v1821_v56 }
  0xff   : > { %v1481_v21 = vpop.f32.mrf.mxu0  ;;  %v1529_v22 = vpop.f32.mrf.mxu1 }
 0x100   : > { %v1365_v23 = vpack.c.bf16 %v926_v19, %v925_v17  ;;  %v1405_v24 = vpack.c.bf16 %v942_v20, %v941_v18  ;;  %v1482_v27 = vadd.f32 %v1481_v21, %v1480_v15  ;;  %v1530_v28 = vadd.f32 %v1529_v22, %v1528_v16 }
 0x101   : > { %v1483_v25 = vpop.f32.mrf.mxu0  ;;  %v1531_v26 = vpop.f32.mrf.mxu1 }
 0x102   : > { %1437 = vst [vmem:[%s1831_s8 + $0x8] sm:$0xff] %v1365_v23   ;;  %1445 = vst [vmem:[%s1831_s8 + $0x48] sm:$0xff] %v1405_v24   ;;  %v927_v35 = vadd.f32 %v1482_v27, %v1821_v56  ;;  %v943_v36 = vadd.f32 %v1530_v28, %v1821_v56 }
 0x103   : > { %v1484_v29 = vpop.f32.mrf.mxu0  ;;  %v1532_v30 = vpop.f32.mrf.mxu1 }
 0x104   : > { %v1485_v31 = vadd.f32 %v1484_v29, %v1483_v25  ;;  %v1533_v32 = vadd.f32 %v1532_v30, %v1531_v26 }
 0x105   : > { %v1486_v33 = vpop.f32.mrf.mxu0  ;;  %v1534_v34 = vpop.f32.mrf.mxu1 }
 0x106   : > { %v928_v37 = vadd.f32 %v1485_v31, %v1821_v56  ;;  %v944_v38 = vadd.f32 %v1533_v32, %v1821_v56 }
 0x107   : > { %v1487_v39 = vpop.f32.mrf.mxu0  ;;  %v1535_v40 = vpop.f32.mrf.mxu1 }
 0x108   : > { %v1370_v41 = vpack.c.bf16 %v928_v37, %v927_v35  ;;  %v1410_v42 = vpack.c.bf16 %v944_v38, %v943_v36  ;;  %v1488_v45 = vadd.f32 %v1487_v39, %v1486_v33  ;;  %v1536_v46 = vadd.f32 %v1535_v40, %v1534_v34 }
 0x109   : > { %v1489_v43 = vpop.f32.mrf.mxu0  ;;  %v1537_v44 = vpop.f32.mrf.mxu1 }
 0x10a   : > { %1438 = vst [vmem:[%s1831_s8 + $0x10] sm:$0xff] %v1370_v41   ;;  %1446 = vst [vmem:[%s1831_s8 + $0x50] sm:$0xff] %v1410_v42   ;;  %v929_v53 = vadd.f32 %v1488_v45, %v1821_v56  ;;  %v945_v54 = vadd.f32 %v1536_v46, %v1821_v56 }
 0x10b   : > { %v1490_v47 = vpop.f32.mrf.mxu0  ;;  %v1538_v48 = vpop.f32.mrf.mxu1 }
 0x10c   : > { %v1491_v49 = vadd.f32 %v1490_v47, %v1489_v43  ;;  %v1539_v50 = vadd.f32 %v1538_v48, %v1537_v44 }
 0x10d   : > { %v1492_v51 = vpop.f32.mrf.mxu0  ;;  %v1540_v52 = vpop.f32.mrf.mxu1 }
 0x10e   : > { %v930_v55 = vadd.f32 %v1491_v49, %v1821_v56  ;;  %v946_v57 = vadd.f32 %v1539_v50, %v1821_v56 }
 0x10f   : > { %v1493_v58 = vpop.f32.mrf.mxu0  ;;  %v1541_v59 = vpop.f32.mrf.mxu1 }
 0x110   : > { %v1375_v60 = vpack.c.bf16 %v930_v55, %v929_v53  ;;  %v1415_v61 = vpack.c.bf16 %v946_v57, %v945_v54  ;;  %v1494_v0 = vadd.f32 %v1493_v58, %v1492_v51  ;;  %v1542_v1 = vadd.f32 %v1541_v59, %v1540_v52 }
 0x111   : > { %v1495_v62 = vpop.f32.mrf.mxu0  ;;  %v1543_v63 = vpop.f32.mrf.mxu1 }
 0x112   : > { %1439 = vst [vmem:[%s1831_s8 + $0x18] sm:$0xff] %v1375_v60   ;;  %1447 = vst [vmem:[%s1831_s8 + $0x58] sm:$0xff] %v1415_v61   ;;  %v931_v8 = vadd.f32 %v1494_v0, %v1821_v56  ;;  %v947_v9 = vadd.f32 %v1542_v1, %v1821_v56 }
 0x113   : > { %v1496_v2 = vpop.f32.mrf.mxu0  ;;  %v1544_v3 = vpop.f32.mrf.mxu1 }
 0x114   : > { %v1497_v4 = vadd.f32 %v1496_v2, %v1495_v62  ;;  %v1545_v5 = vadd.f32 %v1544_v3, %v1543_v63 }
 0x115   : > { %v1498_v6 = vpop.f32.mrf.mxu0  ;;  %v1546_v7 = vpop.f32.mrf.mxu1 }
 0x116   : > { %v932_v10 = vadd.f32 %v1497_v4, %v1821_v56  ;;  %v948_v11 = vadd.f32 %v1545_v5, %v1821_v56 }
 0x117   : > { %v1499_v12 = vpop.f32.mrf.mxu0  ;;  %v1547_v13 = vpop.f32.mrf.mxu1 }
 0x118   : > { %v1380_v14 = vpack.c.bf16 %v932_v10, %v931_v8  ;;  %v1420_v15 = vpack.c.bf16 %v948_v11, %v947_v9  ;;  %v1500_v18 = vadd.f32 %v1499_v12, %v1498_v6  ;;  %v1548_v19 = vadd.f32 %v1547_v13, %v1546_v7 }
 0x119   : > { %v1501_v16 = vpop.f32.mrf.mxu0  ;;  %v1549_v17 = vpop.f32.mrf.mxu1 }
 0x11a   : > { %1440 = vst [vmem:[%s1831_s8 + $0x20] sm:$0xff] %v1380_v14   ;;  %1448 = vst [vmem:[%s1831_s8 + $0x60] sm:$0xff] %v1420_v15   ;;  %v933_v26 = vadd.f32 %v1500_v18, %v1821_v56  ;;  %v949_v27 = vadd.f32 %v1548_v19, %v1821_v56 }
 0x11b   : > { %v1502_v20 = vpop.f32.mrf.mxu0  ;;  %v1550_v21 = vpop.f32.mrf.mxu1 }
 0x11c   : > { %v1503_v22 = vadd.f32 %v1502_v20, %v1501_v16  ;;  %v1551_v23 = vadd.f32 %v1550_v21, %v1549_v17 }
 0x11d   : > { %v1504_v24 = vpop.f32.mrf.mxu0  ;;  %v1552_v25 = vpop.f32.mrf.mxu1 }
 0x11e   : > { %v934_v28 = vadd.f32 %v1503_v22, %v1821_v56  ;;  %v950_v29 = vadd.f32 %v1551_v23, %v1821_v56 }
 0x11f   : > { %v1505_v30 = vpop.f32.mrf.mxu0  ;;  %v1553_v31 = vpop.f32.mrf.mxu1 }
 0x120   : > { %v1385_v32 = vpack.c.bf16 %v934_v28, %v933_v26  ;;  %v1425_v33 = vpack.c.bf16 %v950_v29, %v949_v27  ;;  %v1506_v36 = vadd.f32 %v1505_v30, %v1504_v24  ;;  %v1554_v37 = vadd.f32 %v1553_v31, %v1552_v25 }
 0x121   : > { %v1507_v34 = vpop.f32.mrf.mxu0  ;;  %v1555_v35 = vpop.f32.mrf.mxu1 }
 0x122   : > { %1441 = vst [vmem:[%s1831_s8 + $0x28] sm:$0xff] %v1385_v32   ;;  %1449 = vst [vmem:[%s1831_s8 + $0x68] sm:$0xff] %v1425_v33   ;;  %v935_v44 = vadd.f32 %v1506_v36, %v1821_v56  ;;  %v951_v45 = vadd.f32 %v1554_v37, %v1821_v56 }
 0x123   : > { %v1508_v38 = vpop.f32.mrf.mxu0  ;;  %v1556_v39 = vpop.f32.mrf.mxu1 }
 0x124   : > { %v1509_v40 = vadd.f32 %v1508_v38, %v1507_v34  ;;  %v1557_v41 = vadd.f32 %v1556_v39, %v1555_v35 }
 0x125   : > { %v1510_v42 = vpop.f32.mrf.mxu0  ;;  %v1558_v43 = vpop.f32.mrf.mxu1 }
 0x126   : > { %v936_v46 = vadd.f32 %v1509_v40, %v1821_v56  ;;  %v952_v47 = vadd.f32 %v1557_v41, %v1821_v56 }
 0x127   : > { %v1511_v48 = vpop.f32.mrf.mxu0  ;;  %v1559_v49 = vpop.f32.mrf.mxu1 }
 0x128   : > { %v1390_v50 = vpack.c.bf16 %v936_v46, %v935_v44  ;;  %v1430_v51 = vpack.c.bf16 %v952_v47, %v951_v45  ;;  %v1512_v54 = vadd.f32 %v1511_v48, %v1510_v42  ;;  %v1560_v55 = vadd.f32 %v1559_v49, %v1558_v43 }
 0x129   : > { %v1513_v52 = vpop.f32.mrf.mxu0  ;;  %v1561_v53 = vpop.f32.mrf.mxu1 }
 0x12a   : > { %1442 = vst [vmem:[%s1831_s8 + $0x30] sm:$0xff] %v1390_v50   ;;  %1450 = vst [vmem:[%s1831_s8 + $0x70] sm:$0xff] %v1430_v51   ;;  %v937_v61 = vadd.f32 %v1512_v54, %v1821_v56  ;;  %v953_v62 = vadd.f32 %v1560_v55, %v1821_v56 }
 0x12b   : > { %v1514_v57 = vpop.f32.mrf.mxu0  ;;  %v1562_v58 = vpop.f32.mrf.mxu1 }
 0x12c   : > { %v1515_v59 = vadd.f32 %v1514_v57, %v1513_v52  ;;  %v1563_v60 = vadd.f32 %v1562_v58, %v1561_v53 }
 0x12e   : > { %v938_v63 = vadd.f32 %v1515_v59, %v1821_v56  ;;  %v954_v0 = vadd.f32 %v1563_v60, %v1821_v56 }
 0x130   : > { %v1395_v1 = vpack.c.bf16 %v938_v63, %v937_v61  ;;  %v1435_v2 = vpack.c.bf16 %v954_v0, %v953_v62 }
 0x132   : > { %1443 = vst [vmem:[%s1831_s8 + $0x38] sm:$0xff] %v1395_v1   ;;  %1451 = vst [vmem:[%s1831_s8 + $0x78] sm:$0xff] %v1435_v2  }
 0x133 PF: > { %s13_s14 = sadd.s32 1, %s1690_s14   ;;  %s1890_s12 = smov %s1686_s13 }
 0x134   : > { %p10_p5 = scmp.ge.s32.totalorder %s13_s14, 4   ;;  %s1891_s13 = smov %s1893_s15 }
 0x136   :  { %12 = sbr.rel (!%p10_p5) target bundleno = 2 (0x2), region = 76 }

</bundles_post_ra>
